<compile_context>
chip_gen: v7x
topology: tpu7x:2x2x1
jax: 0.10.0
libtpu: 0.0.40
codegen_flags: <defaults>
</compile_context>

<pallas_src>
import math
import functools

import jax
import jax.numpy as jnp
from jax import lax
from jax.experimental import pallas as pl
from jax.experimental.pallas import tpu as pltpu


def _round_up(x, m):
    return ((x + m - 1) // m) * m


def _pick_q_tile(Tq, max_t=256):
    """Tq tile: multiple of 8 (sublane), capped at max_t (MXU-friendly).

    Remainders are handled by zero-padding Tq in the wrapper (padded rows are
    sliced off afterwards).  v6e has the VMEM headroom for max_t=512 once the
    invariant inputs are single-buffered; 256 is the safe default for v7x.
    """
    if Tq <= max_t:
        return _round_up(Tq, 8)
    return max_t


def _pick_k_chunk(Tk, max_t=512):
    """Tk streaming chunk: a multiple-of-8 divisor of Tk, <= max_t.

    Falls back to the full Tk (single chunk, no streaming) when none exists.
    """
    if Tk <= max_t:
        return Tk
    for t in range(max_t, 7, -1):
        if Tk % t == 0 and t % 8 == 0:
            return t
    # TODO(synk): pad + mask Tk so awkward lengths can still stream.
    return Tk


def _cross_attn_kernel(n_k_chunks, tk,
                       tgt_ref, src_ref,
                       wqT_ref, bq_ref, wkT_ref, bk_ref, wvT_ref, bv_ref,
                       out_ref, k_scratch, v_scratch):
    qi = pl.program_id(1)

    # Project K/V once per batch element (first Tq tile); scratch persists
    # across the qi axis so later tiles reuse it.
    # TODO(synk): overlap this projection with the first Q tiles instead of a
    # serial region at the head of each batch element.
    @pl.when(qi == 0)
    def _():
        s = src_ref[0]                                              # (Tk, Dp) bf16
        k = jnp.dot(s, wkT_ref[...], preferred_element_type=jnp.float32) + bk_ref[...]
        v = jnp.dot(s, wvT_ref[...], preferred_element_type=jnp.float32) + bv_ref[...]
        k_scratch[...] = k.astype(jnp.bfloat16)
        v_scratch[...] = v.astype(jnp.bfloat16)

    # Q projection for this Tq tile. 1/sqrt(dim) is already folded into
    # wqT/bq at prepack time, so no per-tile scale multiply here.
    t = tgt_ref[0]                                                  # (tq, Dp) bf16
    q = (jnp.dot(t, wqT_ref[...], preferred_element_type=jnp.float32)
         + bq_ref[...]).astype(jnp.bfloat16)

    tq, Dp = q.shape

    # Flash-style streaming over Tk chunks with online softmax: live
    # intermediates are bounded to (tq, tk) regardless of Tk.
    def body(c, carry):
        m, l, acc = carry
        off = c * tk
        if tk % 8 == 0:
            off = pl.multiple_of(off, 128 if tk % 128 == 0 else 8)
        k_c = k_scratch[pl.ds(off, tk), :]                          # (tk, Dp) bf16
        v_c = v_scratch[pl.ds(off, tk), :]
        # Contract trailing dims of Q and K -> no explicit K transpose (no XLU).
        s = lax.dot_general(q, k_c,
                            dimension_numbers=(((1,), (1,)), ((), ())),
                            preferred_element_type=jnp.float32)     # (tq, tk) f32
        m_new = jnp.maximum(m, jnp.max(s, axis=-1, keepdims=True))
        alpha = jnp.exp(m - m_new)
        p = jnp.exp(s - m_new)
        l_new = alpha * l + jnp.sum(p, axis=-1, keepdims=True)
        acc_new = alpha * acc + jnp.dot(p.astype(jnp.bfloat16), v_c,
                                        preferred_element_type=jnp.float32)
        return m_new, l_new, acc_new

    m0 = jnp.full((tq, 1), -jnp.inf, dtype=jnp.float32)
    l0 = jnp.zeros((tq, 1), dtype=jnp.float32)
    acc0 = jnp.zeros((tq, Dp), dtype=jnp.float32)
    _, l, acc = lax.fori_loop(0, n_k_chunks, body, (m0, l0, acc0),
                              unroll=(n_k_chunks <= 8))

    # Dropout: identity (eval mode).
    # Approximate reciprocal -> EUP slot (fine under bf16 tolerances; switch
    # to an exact divide for parity-sensitive uses).
    out = acc * pl.reciprocal(l, approx=True)
    out_ref[0] = out.astype(out_ref.dtype)                          # lane-dense: Dp % 128 == 0


def prepack_params(params, dim):
    """One-time weight prep: transpose, fold 1/sqrt(dim) into Q proj, cast to
    bf16, and zero-pad the feature dim to a multiple of 128 (lane-dense)."""
    Dp = _round_up(dim, 128)
    pad = Dp - dim
    scale = 1.0 / math.sqrt(dim)

    def prep_w(w):                       # (dim, dim) -> transposed, padded, bf16
        wT = jnp.asarray(w, jnp.float32).T
        if pad:
            wT = jnp.pad(wT, ((0, pad), (0, pad)))
        return wT.astype(jnp.bfloat16)

    def prep_b(b):                       # (dim,) -> (1, Dp) f32
        b = jnp.asarray(b, jnp.float32)
        if pad:
            b = jnp.pad(b, (0, pad))
        return b.reshape(1, Dp)

    return {
        "wqT": prep_w(params["wq"] * scale), "bq": prep_b(params["bq"] * scale),
        "wkT": prep_w(params["wk"]),         "bk": prep_b(params["bk"]),
        "wvT": prep_w(params["wv"]),         "bv": prep_b(params["bv"]),
        "dim": dim, "dim_padded": Dp,
    }


def cross_attention(target, source, packed, *, q_tile_cap=256):
    """target: (B, Tq, D) f32, source: (B, Tk, D) f32 -> (B, Tq, D) f32."""
    B, Tq, D = target.shape
    _, Tk, D2 = source.shape
    assert D == D2 == packed["dim"]
    Dp = packed["dim_padded"]

    tq = _pick_q_tile(Tq, q_tile_cap)
    Tq_pad = _round_up(Tq, tq)
    nqt = Tq_pad // tq
    tk = _pick_k_chunk(Tk)
    n_kc = Tk // tk

    # bf16 activations at the kernel boundary; zero-pad Tq (rows sliced off
    # below) and D (padded feature columns stay exactly zero end-to-end).
    tgt = target.astype(jnp.bfloat16)
    if Tq_pad != Tq or Dp != D:
        tgt = jnp.pad(tgt, ((0, 0), (0, Tq_pad - Tq), (0, Dp - D)))
    src = source.astype(jnp.bfloat16)
    if Dp != D:
        src = jnp.pad(src, ((0, 0), (0, 0), (0, Dp - D)))

    kernel = functools.partial(_cross_attn_kernel, n_kc, tk)

    # Grid-invariant inputs: single-buffered (no pointless double-buffer VMEM).
    invariant = dict(pipeline_mode=pl.Buffered(1))
    weight_spec = pl.BlockSpec((Dp, Dp), lambda b, qi: (0, 0), **invariant)
    bias_spec = pl.BlockSpec((1, Dp), lambda b, qi: (0, 0), **invariant)
    src_spec = pl.BlockSpec((1, Tk, Dp), lambda b, qi: (b, 0, 0), **invariant)

    # Explicit VMEM budget (single-buffered weights/bias/source, double-buffered
    # target/out tiles, K/V scratch, loop intermediates) + headroom, clamped to
    # a range that is safe on v5e/v6e (128 MiB physical) and v7x (64 MiB).
    est = (
        3 * Dp * Dp * 2            # weights, bf16, single-buffered
        + 3 * 8 * Dp * 4           # biases (sublane-padded), f32
        + Tk * Dp * 2              # source window, bf16, single-buffered
        + 2 * tq * Dp * 2          # target tile, bf16, double-buffered
        + 2 * tq * Dp * 4          # output tile, f32, double-buffered
        + 2 * Tk * Dp * 2          # K/V scratch, bf16
        + 4 * tq * tk * 4          # scores / exp intermediates, f32
        + 4 * tq * Dp * 4          # q / acc intermediates, f32
    )
    vmem_limit = min(max(int(est * 1.5), 32 * 1024 * 1024), 64 * 1024 * 1024)

    out = pl.pallas_call(
        kernel,
        out_shape=jax.ShapeDtypeStruct((B, Tq_pad, Dp), target.dtype),
        grid_spec=pltpu.PrefetchScalarGridSpec(
            num_scalar_prefetch=0,
            grid=(B, nqt),
            in_specs=[
                pl.BlockSpec((1, tq, Dp), lambda b, qi: (b, qi, 0)),  # target tile
                src_spec,                                             # source (per batch)
                weight_spec, bias_spec,                               # q_proj (scale folded)
                weight_spec, bias_spec,                               # k_proj
                weight_spec, bias_spec,                               # v_proj
            ],
            out_specs=pl.BlockSpec((1, tq, Dp), lambda b, qi: (b, qi, 0)),
            scratch_shapes=[
                pltpu.VMEM((Tk, Dp), jnp.bfloat16),   # projected K, persists over Tq tiles
                pltpu.VMEM((Tk, Dp), jnp.bfloat16),   # projected V, persists over Tq tiles
            ],
        ),
        compiler_params=pltpu.CompilerParams(
            # Batch axis parallel (megacore); Tq-tile axis carries the K/V
            # scratch, so it must be sequential.
            dimension_semantics=("parallel", "arbitrary"),
            vmem_limit_bytes=vmem_limit,
        ),
    )(tgt, src,
      packed["wqT"], packed["bq"],
      packed["wkT"], packed["bk"],
      packed["wvT"], packed["bv"])

    return out[:, :Tq, :D]


def _reference(target, source, params, dim):
    # Pure-JAX f32 reference of the PyTorch forward (eval mode).
    q = target @ params["wq"].T + params["bq"]
    k = source @ params["wk"].T + params["bk"]
    v = source @ params["wv"].T + params["bv"]
    scores = q @ jnp.swapaxes(k, -1, -2) / math.sqrt(dim)
    attn = jax.nn.softmax(scores, axis=-1)
    return attn @ v


def _init_params(key, dim):
    # Deterministic init mimicking nn.Linear default (uniform(-1/sqrt(dim), 1/sqrt(dim))).
    bound = 1.0 / math.sqrt(dim)
    ks = jax.random.split(key, 6)
    u = lambda k, shape: jax.random.uniform(k, shape, jnp.float32, -bound, bound)
    return {
        "wq": u(ks[0], (dim, dim)), "bq": u(ks[1], (dim,)),
        "wk": u(ks[2], (dim, dim)), "bk": u(ks[3], (dim,)),
        "wv": u(ks[4], (dim, dim)), "bv": u(ks[5], (dim,)),
    }


if __name__ == "__main__":
    B, Tq, Tk, D = 2, 8, 8, 32

    key = jax.random.PRNGKey(0)
    kp, kt, ks = jax.random.split(key, 3)
    params = _init_params(kp, D)
    packed = prepack_params(params, D)       # one-time weight prep (cached across calls)
    target = jax.random.normal(kt, (B, Tq, D), jnp.float32)
    source = jax.random.normal(ks, (B, Tk, D), jnp.float32)

    out = cross_attention(target, source, packed)
    out = jax.block_until_ready(out)

    ref = _reference(target, source, params, D)
    assert out.shape == (B, Tq, D)
    # bf16 matmul inputs (f32 accumulation) -> loosened tolerance vs f32 reference.
    assert jnp.allclose(out, ref, atol=5e-2, rtol=5e-2), "mismatch vs reference"

    print("KERNEL_OK")
</pallas_src>

<mosaic_0001>
module attributes {stable_mosaic.version = 11 : i64} {
  func.func @_cross_attn_kernel(%arg0: i32, %arg1: i32, %arg2: memref<1x8x128xbf16, #tpu.memory_space<vmem>>, %arg3: memref<1x8x128xbf16, #tpu.memory_space<vmem>>, %arg4: memref<128x128xbf16, #tpu.memory_space<vmem>>, %arg5: memref<1x128xf32, #tpu.memory_space<vmem>>, %arg6: memref<128x128xbf16, #tpu.memory_space<vmem>>, %arg7: memref<1x128xf32, #tpu.memory_space<vmem>>, %arg8: memref<128x128xbf16, #tpu.memory_space<vmem>>, %arg9: memref<1x128xf32, #tpu.memory_space<vmem>>, %arg10: memref<1x8x128xf32, #tpu.memory_space<vmem>>, %arg11: memref<8x128xbf16, #tpu.memory_space<vmem>>, %arg12: memref<8x128xbf16, #tpu.memory_space<vmem>>) attributes {dimension_semantics = [#tpu.dimension_semantics<parallel>, #tpu.dimension_semantics<arbitrary>], iteration_bounds = array<i64: 2, 1>, scalar_prefetch = 0 : i64, scratch_operands = 2 : i64, tpu.core_type = #tpu.core_type<tc>, window_params = [{transform_indices = @transform_0, window_bounds = array<i64: 1, 8, 128>}, {pipeline_mode = #tpu.pipeline_mode<synchronous>, transform_indices = @transform_1, window_bounds = array<i64: 1, 8, 128>}, {pipeline_mode = #tpu.pipeline_mode<synchronous>, transform_indices = @transform_2, window_bounds = array<i64: 128, 128>}, {pipeline_mode = #tpu.pipeline_mode<synchronous>, transform_indices = @transform_3, window_bounds = array<i64: 1, 128>}, {pipeline_mode = #tpu.pipeline_mode<synchronous>, transform_indices = @transform_4, window_bounds = array<i64: 128, 128>}, {pipeline_mode = #tpu.pipeline_mode<synchronous>, transform_indices = @transform_5, window_bounds = array<i64: 1, 128>}, {pipeline_mode = #tpu.pipeline_mode<synchronous>, transform_indices = @transform_6, window_bounds = array<i64: 128, 128>}, {pipeline_mode = #tpu.pipeline_mode<synchronous>, transform_indices = @transform_7, window_bounds = array<i64: 1, 128>}, {transform_indices = @transform_8, window_bounds = array<i64: 1, 8, 128>}]} {
    %c0_i32 = arith.constant 0 : i32
    %0 = arith.cmpi eq, %arg1, %c0_i32 : i32
    %1 = arith.extui %0 : i1 to i32
    %c0_i32_0 = arith.constant 0 : i32
    %2 = arith.cmpi ne, %1, %c0_i32_0 : i32
    scf.if %2 {
      %c0_20 = arith.constant 0 : index
      %c0_21 = arith.constant 0 : index
      %c0_22 = arith.constant 0 : index
      %44 = vector.load %arg3[%c0_20, %c0_21, %c0_22] : memref<1x8x128xbf16, #tpu.memory_space<vmem>>, vector<1x8x128xbf16>
      %45 = vector.shape_cast %44 : vector<1x8x128xbf16> to vector<8x128xbf16>
      %c0_23 = arith.constant 0 : index
      %c0_24 = arith.constant 0 : index
      %46 = vector.load %arg6[%c0_23, %c0_24] : memref<128x128xbf16, #tpu.memory_space<vmem>>, vector<128x128xbf16>
      %cst_25 = arith.constant dense<0.000000e+00> : vector<8x128xf32>
      %47 = tpu.matmul %45, %46, %cst_25 {dimension_numbers = #tpu.dot_dimension_numbers<[1], [0], [0], [1], [0, 0, 1, 1], [], []>} : vector<8x128xbf16>, vector<128x128xbf16>, vector<8x128xf32> -> vector<8x128xf32>
      %c0_26 = arith.constant 0 : index
      %c0_27 = arith.constant 0 : index
      %48 = vector.load %arg7[%c0_26, %c0_27] : memref<1x128xf32, #tpu.memory_space<vmem>>, vector<1x128xf32>
      %49 = vector.broadcast %48 : vector<1x128xf32> to vector<8x128xf32>
      %50 = arith.addf %47, %49 : vector<8x128xf32>
      %c0_28 = arith.constant 0 : index
      %c0_29 = arith.constant 0 : index
      %51 = vector.load %arg8[%c0_28, %c0_29] : memref<128x128xbf16, #tpu.memory_space<vmem>>, vector<128x128xbf16>
      %cst_30 = arith.constant dense<0.000000e+00> : vector<8x128xf32>
      %52 = tpu.matmul %45, %51, %cst_30 {dimension_numbers = #tpu.dot_dimension_numbers<[1], [0], [0], [1], [0, 0, 1, 1], [], []>} : vector<8x128xbf16>, vector<128x128xbf16>, vector<8x128xf32> -> vector<8x128xf32>
      %c0_31 = arith.constant 0 : index
      %c0_32 = arith.constant 0 : index
      %53 = vector.load %arg9[%c0_31, %c0_32] : memref<1x128xf32, #tpu.memory_space<vmem>>, vector<1x128xf32>
      %54 = vector.broadcast %53 : vector<1x128xf32> to vector<8x128xf32>
      %55 = arith.addf %52, %54 : vector<8x128xf32>
      %56 = arith.truncf %50 : vector<8x128xf32> to vector<8x128xbf16>
      %c0_33 = arith.constant 0 : index
      %c0_34 = arith.constant 0 : index
      %57 = vector.load %arg11[%c0_33, %c0_34] : memref<8x128xbf16, #tpu.memory_space<vmem>>, vector<8x128xbf16>
      tpu.vector_store %arg11[%c0_33, %c0_34], %56 {strides = array<i32>} : memref<8x128xbf16, #tpu.memory_space<vmem>>, vector<8x128xbf16>,
      %58 = arith.truncf %55 : vector<8x128xf32> to vector<8x128xbf16>
      %c0_35 = arith.constant 0 : index
      %c0_36 = arith.constant 0 : index
      %59 = vector.load %arg12[%c0_35, %c0_36] : memref<8x128xbf16, #tpu.memory_space<vmem>>, vector<8x128xbf16>
      tpu.vector_store %arg12[%c0_35, %c0_36], %58 {strides = array<i32>} : memref<8x128xbf16, #tpu.memory_space<vmem>>, vector<8x128xbf16>,
    } else {
    }
    %c0 = arith.constant 0 : index
    %c0_1 = arith.constant 0 : index
    %c0_2 = arith.constant 0 : index
    %3 = vector.load %arg2[%c0, %c0_1, %c0_2] : memref<1x8x128xbf16, #tpu.memory_space<vmem>>, vector<1x8x128xbf16>
    %4 = vector.shape_cast %3 : vector<1x8x128xbf16> to vector<8x128xbf16>
    %c0_3 = arith.constant 0 : index
    %c0_4 = arith.constant 0 : index
    %5 = vector.load %arg4[%c0_3, %c0_4] : memref<128x128xbf16, #tpu.memory_space<vmem>>, vector<128x128xbf16>
    %cst = arith.constant dense<0.000000e+00> : vector<8x128xf32>
    %6 = tpu.matmul %4, %5, %cst {dimension_numbers = #tpu.dot_dimension_numbers<[1], [0], [0], [1], [0, 0, 1, 1], [], []>} : vector<8x128xbf16>, vector<128x128xbf16>, vector<8x128xf32> -> vector<8x128xf32>
    %c0_5 = arith.constant 0 : index
    %c0_6 = arith.constant 0 : index
    %7 = vector.load %arg5[%c0_5, %c0_6] : memref<1x128xf32, #tpu.memory_space<vmem>>, vector<1x128xf32>
    %8 = vector.broadcast %7 : vector<1x128xf32> to vector<8x128xf32>
    %9 = arith.addf %6, %8 : vector<8x128xf32>
    %10 = arith.truncf %9 : vector<8x128xf32> to vector<8x128xbf16>
    %cst_7 = arith.constant 0xFF800000 : f32
    %11 = vector.broadcast %cst_7 : f32 to vector<8x1xf32>
    %cst_8 = arith.constant 0.000000e+00 : f32
    %12 = vector.broadcast %cst_8 : f32 to vector<8x1xf32>
    %cst_9 = arith.constant 0.000000e+00 : f32
    %13 = vector.broadcast %cst_9 : f32 to vector<8x128xf32>
    %c0_i32_10 = arith.constant 0 : i32
    %c8_i32 = arith.constant 8 : i32
    %14 = arith.muli %c0_i32_10, %c8_i32 : i32
    %15 = tpu.assume_multiple %14, 8 : i32
    %16 = arith.index_cast %15 : i32 to index
    %c0_11 = arith.constant 0 : index
    %17 = vector.load %arg11[%16, %c0_11] : memref<8x128xbf16, #tpu.memory_space<vmem>>, vector<8x128xbf16>
    %18 = arith.index_cast %15 : i32 to index
    %c0_12 = arith.constant 0 : index
    %19 = vector.load %arg12[%18, %c0_12] : memref<8x128xbf16, #tpu.memory_space<vmem>>, vector<8x128xbf16>
    %cst_13 = arith.constant dense<0.000000e+00> : vector<8x8xf32>
    %20 = tpu.matmul %10, %17, %cst_13 {dimension_numbers = #tpu.dot_dimension_numbers<[1], [1], [0], [0], [0, 0, 1, 0], [], []>} : vector<8x128xbf16>, vector<8x128xbf16>, vector<8x8xf32> -> vector<8x8xf32>
    %cst_14 = arith.constant dense<0xFF800000> : vector<8xf32>
    %21 = vector.multi_reduction <maximumf>, %20, %cst_14 [1] : vector<8x8xf32> to vector<8xf32>
    %22 = vector.shape_cast %21 : vector<8xf32> to vector<8x1xf32>
    %23 = arith.maximumf %11, %22 : vector<8x1xf32>
    %24 = arith.subf %11, %23 : vector<8x1xf32>
    %25 = math.exp %24 : vector<8x1xf32>
    %26 = vector.broadcast %23 : vector<8x1xf32> to vector<8x8xf32>
    %27 = arith.subf %20, %26 : vector<8x8xf32>
    %28 = math.exp %27 : vector<8x8xf32>
    %29 = arith.mulf %25, %12 : vector<8x1xf32>
    %cst_15 = arith.constant dense<0.000000e+00> : vector<8xf32>
    %30 = vector.multi_reduction <add>, %28, %cst_15 [1] : vector<8x8xf32> to vector<8xf32>
    %31 = vector.shape_cast %30 : vector<8xf32> to vector<8x1xf32>
    %32 = arith.addf %29, %31 : vector<8x1xf32>
    %33 = vector.broadcast %25 : vector<8x1xf32> to vector<8x128xf32>
    %34 = arith.mulf %33, %13 : vector<8x128xf32>
    %35 = arith.truncf %28 : vector<8x8xf32> to vector<8x8xbf16>
    %cst_16 = arith.constant dense<0.000000e+00> : vector<8x128xf32>
    %36 = tpu.matmul %35, %19, %cst_16 {dimension_numbers = #tpu.dot_dimension_numbers<[1], [0], [0], [1], [0, 0, 1, 1], [], []>} : vector<8x8xbf16>, vector<8x128xbf16>, vector<8x128xf32> -> vector<8x128xf32>
    %37 = arith.addf %34, %36 : vector<8x128xf32>
    %c1_i32 = arith.constant 1 : i32
    %38 = tpu.reciprocal %32 {approx = true} : vector<8x1xf32> -> vector<8x1xf32>
    %39 = vector.broadcast %38 : vector<8x1xf32> to vector<8x128xf32>
    %40 = arith.mulf %37, %39 : vector<8x128xf32>
    %c0_17 = arith.constant 0 : index
    %c0_18 = arith.constant 0 : index
    %c0_19 = arith.constant 0 : index
    %41 = vector.load %arg10[%c0_17, %c0_18, %c0_19] : memref<1x8x128xf32, #tpu.memory_space<vmem>>, vector<1x8x128xf32>
    %42 = vector.shape_cast %41 : vector<1x8x128xf32> to vector<8x128xf32>
    %43 = vector.shape_cast %40 : vector<8x128xf32> to vector<1x8x128xf32>
    tpu.vector_store %arg10[%c0_17, %c0_18, %c0_19], %43 {strides = array<i32>} : memref<1x8x128xf32, #tpu.memory_space<vmem>>, vector<1x8x128xf32>,
    return
  }
  func.func @transform_0(%arg0: i32, %arg1: i32) -> (i32, i32, i32) {
    %c0_i32 = arith.constant 0 : i32
    %c0_i32_0 = arith.constant 0 : i32
    return %arg0, %arg1, %c0_i32 : i32, i32, i32
  }
  func.func @transform_1(%arg0: i32, %arg1: i32) -> (i32, i32, i32) {
    %c0_i32 = arith.constant 0 : i32
    %c0_i32_0 = arith.constant 0 : i32
    %c0_i32_1 = arith.constant 0 : i32
    return %arg0, %c0_i32, %c0_i32_0 : i32, i32, i32
  }
  func.func @transform_2(%arg0: i32, %arg1: i32) -> (i32, i32) {
    %c0_i32 = arith.constant 0 : i32
    %c0_i32_0 = arith.constant 0 : i32
    %c0_i32_1 = arith.constant 0 : i32
    return %c0_i32, %c0_i32_0 : i32, i32
  }
  func.func @transform_3(%arg0: i32, %arg1: i32) -> (i32, i32) {
    %c0_i32 = arith.constant 0 : i32
    %c0_i32_0 = arith.constant 0 : i32
    %c0_i32_1 = arith.constant 0 : i32
    return %c0_i32, %c0_i32_0 : i32, i32
  }
  func.func @transform_4(%arg0: i32, %arg1: i32) -> (i32, i32) {
    %c0_i32 = arith.constant 0 : i32
    %c0_i32_0 = arith.constant 0 : i32
    %c0_i32_1 = arith.constant 0 : i32
    return %c0_i32, %c0_i32_0 : i32, i32
  }
  func.func @transform_5(%arg0: i32, %arg1: i32) -> (i32, i32) {
    %c0_i32 = arith.constant 0 : i32
    %c0_i32_0 = arith.constant 0 : i32
    %c0_i32_1 = arith.constant 0 : i32
    return %c0_i32, %c0_i32_0 : i32, i32
  }
  func.func @transform_6(%arg0: i32, %arg1: i32) -> (i32, i32) {
    %c0_i32 = arith.constant 0 : i32
    %c0_i32_0 = arith.constant 0 : i32
    %c0_i32_1 = arith.constant 0 : i32
    return %c0_i32, %c0_i32_0 : i32, i32
  }
  func.func @transform_7(%arg0: i32, %arg1: i32) -> (i32, i32) {
    %c0_i32 = arith.constant 0 : i32
    %c0_i32_0 = arith.constant 0 : i32
    %c0_i32_1 = arith.constant 0 : i32
    return %c0_i32, %c0_i32_0 : i32, i32
  }
  func.func @transform_8(%arg0: i32, %arg1: i32) -> (i32, i32, i32) {
    %c0_i32 = arith.constant 0 : i32
    %c0_i32_0 = arith.constant 0 : i32
    return %arg0, %arg1, %c0_i32 : i32, i32, i32
  }
}

</mosaic_0001>

<bundles_post_ra>
// kernel: tpu_custom_call.1
= control target key start
LH: loop header
LB: loop body
LE: loop exit
PB: predicated region body
PF: predicated region fallthrough
CT: control target
= control target key end

     0   :  { %s1922_s0 = inlined_call_operand.hbm [shape: bf16[2,8,128], index: 0, kind: input, shape index: {}]   ;;  %s1923_s1 = inlined_call_operand.hbm [shape: bf16[2,8,128], index: 1, kind: input, shape index: {}]   ;;  %s1924_s2 = inlined_call_operand.hbm [shape: bf16[128,128], index: 2, kind: input, shape index: {}]   ;;  %s1925_s3 = inlined_call_operand.vmem [shape: f32[1,128], index: 3, kind: input, shape index: {}]   ;;  %s1926_s4 = inlined_call_operand.hbm [shape: bf16[128,128], index: 4, kind: input, shape index: {}]   ;;  %s1927_s5 = inlined_call_operand.vmem [shape: f32[1,128], index: 5, kind: input, shape index: {}]   ;;  %s1928_s6 = inlined_call_operand.hbm [shape: bf16[128,128], index: 6, kind: input, shape index: {}]   ;;  %s1929_s7 = inlined_call_operand.vmem [shape: f32[1,128], index: 7, kind: input, shape index: {}]   ;;  %s1930_s8 = inlined_call_operand.hbm [shape: f32[2,8,128], index: 8, kind: output, shape index: {}]  }
   0x1   :  { %1940 = sst [smem:[#allocation21_spill]] %s1923_s1 }
   0x2   :  { %1941 = sst [smem:[#allocation22_spill]] %s1926_s4 }
   0x3   :  { %1942 = sst [smem:[#allocation23_spill]] %s1930_s8 }
   0x4   :  { %13 = vsyncpa [#allocation5], 0 }
   0x5   :  { %15 = vsyncpa [#allocation5 + $0x1], 0 }
   0x6   :  { %16 = vsyncpa [#allocation8], 0 }
   0x7   :  { %17 = vsyncpa [#allocation11], 0 }
   0x8   :  { %18 = vsyncpa [#allocation6], 0 }
   0x9   :  { %20 = vsyncpa [#allocation6 + $0x1], 0  ;;  %s1569_s27 = smov 0   ;;  %s1571_s28 = smov 0  }
   0xa   :  { %s1573_s29 = smov 0   ;;  %s1575_s30 = smov 0  }
   0xb   :  { %s1577_s9 = smov 0   ;;  %s1579_s10 = smov 0  }
   0xc LB: > { %1943 = sst [smem:[#allocation19_spill]] %s1492_s27  ;;  %s990_s11 = sadd.s32 4294967295, %s1512_s10   ;;  %s1512_s10 = sphi %s1579_s10, %s26_s10   ;;  %s1508_s9 = sphi %s1577_s9, %s1971_s9   ;;  %s1504_s30 = sphi %s1575_s30, %s1970_s30   ;;  %s1500_s29 = sphi %s1573_s29, %s1969_s29   ;;  %s1496_s28 = sphi %s1571_s28, %s1968_s28   ;;  %s1492_s27 = sphi %s1569_s27, %s1967_s27  }
   0xd   : > { %s991_s12 = sadd.s32 4294967294, %s1512_s10   ;;  %p60_p0 = scmp.ne.s32.totalorder %s1496_s28, %s1492_s27 }
   0xe   : > { %p1603_p1 = scmp.eq.s32.totalorder %s990_s11, 0  ;;  %p1607_p2 = scmp.eq.s32.totalorder %s990_s11, 1 }
   0xf   : > { %p244_p3 = scmp.eq.s32.totalorder %s991_s12, 1  ;;  %p992_p5 = scmp.ge.s32.totalorder %s1512_s10, 1 }
  0x10   : > { %s1944_s13 = scalar_select %p1603_p1, 1, 0 }
  0x11   : > { %s1945_s14 = scalar_select %p1607_p2, 1, 0 }
  0x12   : > { %p1613_p4 = por %p1603_p1, %p60_p0  ;;  %p1618_p6 = por %p244_p3, %p60_p0 }
  0x13   : > { %p251_p7 = scmp.lt.s32.totalorder %s1512_s10, 3  ;;  %s993_s17 = sshll.u32 %s1504_s30, 6 }
  0x14   : > { %s1946_s15 = scalar_select %p1613_p4, 1, 0 }
  0x15   : > { %s1947_s16 = scalar_select %p1618_p6, 1, 0 }
  0x16   : > { %p1624_p8 = pnand %p992_p5, %p251_p7  ;;  %s1950_s1 = sld [smem:[#allocation21_spill]] }
  0x17   : > { %1948 = sst [smem:[#allocation20_spill]] %s1947_s16  ;;  %s1514_s22 = smov [#allocation7]  }
  0x18   : > { %s1949_s18 = scalar_select %p1624_p8, 1, 0 }
  0x19   : > { %s266_s23 = sshll.u32 %s1514_s22, 4  ;;  %p1159_p9 = pneg %p1624_p8  ;;  %s267_s23 = int_to_ptr.vmem [resolvable:$true] %s266_s23 }
  0x1b   : > { %p1638_p11 = pnand %p1159_p9, %p1613_p4  ;;  %p1644_p12 = pnand %p1159_p9, %p1603_p1 }
  0x1c   : > { %s1631_s21 = scalar_lea.hbm %s1950_s1, %s993_s17  ;;  %s1279_s17 = scalar_lea.hbm %s1950_s1, 128 }
  0x1d   : > { %s1952_s25 = scalar_select %p1644_p12, 1, 0 }
  0x1e   : > { %s1274_s26 = scalar_lea.hbm %s1631_s21, 64  ;;  %p1276_p0 = pneg %p1638_p11 }
  0x1f   : > { %p1275_p13 = scmp.ne.s32.totalorder %s1631_s21, %s1274_s26  ;;  %p1280_p7 = scmp.lt.u32.totalorder %s1631_s21, %s1950_s1 }
  0x20   : > { %p1281_p9 = scmp.lt.u32.totalorder %s1279_s17, %s1274_s26  ;;  %p1283_p6 = scmp.lt.u32.totalorder %s1274_s26, %s1631_s21 }
  0x21   : > { %p1277_p3 = pnand %p1276_p0, %p1275_p13 }
  0x22   : > { %p1282_p10 = por %p1281_p9, %p1280_p7 }
  0x23   : > { %p1278_p5 = pneg %p1277_p3 }
  0x24   : > { %p1284_p1 = por %p1283_p6, %p1282_p10 }
  0x26   : > { %p1285_p4 = pnand %p1284_p1, %p1278_p5 }
  0x28   : > { %1288 = shalt.err (!%p1285_p4)
}
  0x29   : > { %s1289_s22 = scalar_lea.vmem %s267_s23, 64  ;;  %p1297_p2 = scmp.lt.s32.totalorder %s267_s23, %s267_s23 }
  0x2a   : > { %p1290_p8 = scmp.ne.s32.totalorder %s267_s23, %s1289_s22  ;;  %p1298_p12 = scmp.lt.s32.totalorder %s1289_s22, %s1289_s22 }
  0x2c   : > { %p1292_p13 = pnand %p1290_p8, %p1276_p0  ;;  %p1299_p7 = por %p1298_p12, %p1297_p2 }
  0x2e   : > { %p1293_p3 = pneg %p1292_p13 }
  0x30   : > { %p1300_p9 = pnand %p1299_p7, %p1293_p3 }
  0x32   : > { %1303 = shalt.err (!%p1300_p9)
}
  0x33   : > { %1162 = dma.hbm_to_vmem [thread:$0]  (!%p1638_p11), %s1631_s21, 64, %s267_s23, [#allocation8]  }
  0x34   : > { %s1515_s26 = smov [#allocation10]   ;;  %s1516_s12 = smov [#allocation9]  }
  0x35   : > { %s292_s11 = sshll.u32 %s1515_s26, 4  ;;  %s276_s17 = sshll.u32 %s1516_s12, 4  ;;  %s293_s11 = int_to_ptr.vmem [resolvable:$true] %s292_s11  ;;  %s277_s17 = int_to_ptr.vmem [resolvable:$true] %s276_s17 }
  0x36   : > { %s1953_s4 = sld [smem:[#allocation22_spill]]  ;;  %p1954_p2 = scmp.ne.s32.totalorder %s1952_s25, 0 }
  0x38   : > { %p1677_p4 = pneg %p1954_p2 }
  0x3c   : > { %s1304_s1 = scalar_lea.hbm %s1953_s4, 1024 }
  0x3d   : > { %p1305_p1 = scmp.ne.s32.totalorder %s1953_s4, %s1304_s1  ;;  %p1311_p10 = scmp.lt.u32.totalorder %s1304_s1, %s1953_s4 }
  0x3f   : > { %p1307_p6 = pnand %p1677_p4, %p1305_p1 }
  0x41   : > { %p1308_p8 = pneg %p1307_p6 }
  0x43   : > { %p1313_p11 = pnand %p1311_p10, %p1308_p8 }
  0x45   : > { %1316 = shalt.err (!%p1313_p11)
}
  0x46   : > { %s1317_s24 = scalar_lea.vmem %s293_s11, 1024  ;;  %p1325_p13 = scmp.lt.s32.totalorder %s293_s11, %s293_s11 }
  0x47   : > { %p1318_p12 = scmp.ne.s32.totalorder %s293_s11, %s1317_s24  ;;  %p1326_p3 = scmp.lt.s32.totalorder %s1317_s24, %s1317_s24 }
  0x49   : > { %p1320_p0 = pnand %p1318_p12, %p1677_p4  ;;  %p1327_p7 = por %p1326_p3, %p1325_p13 }
  0x4b   : > { %p1321_p5 = pneg %p1320_p0 }
  0x4d   : > { %p1328_p9 = pnand %p1327_p7, %p1321_p5 }
  0x4f   : > { %1331 = shalt.err (!%p1328_p9)
}
  0x50   : > { %s1517_s27 = smov 64   ;;  %s1518_s16 = smov 4  }
  0x51   : > { %1168 = dma.hbm_to_vmem [thread:$0]  (!%p1954_p2), %s1953_s4, 1024, %s293_s11, [#allocation11], %s1517_s27, %s1517_s27, %s1518_s16  }
  0x52   : > { %s1332_s20 = scalar_lea.hbm %s1924_s2, 1024 }
  0x53   : > { %p1333_p1 = scmp.ne.s32.totalorder %s1924_s2, %s1332_s20  ;;  %p1339_p10 = scmp.lt.u32.totalorder %s1332_s20, %s1924_s2 }
  0x55   : > { %p1335_p6 = pnand %p1333_p1, %p1677_p4 }
  0x57   : > { %p1336_p8 = pneg %p1335_p6 }
  0x59   : > { %p1341_p11 = pnand %p1339_p10, %p1336_p8 }
  0x5b   : > { %1344 = shalt.err (!%p1341_p11)
}
  0x5c   : > { %s1345_s1 = scalar_lea.vmem %s277_s17, 1024  ;;  %p1353_p13 = scmp.lt.s32.totalorder %s277_s17, %s277_s17 }
  0x5d   : > { %p1346_p12 = scmp.ne.s32.totalorder %s277_s17, %s1345_s1  ;;  %p1354_p3 = scmp.lt.s32.totalorder %s1345_s1, %s1345_s1 }
  0x5f   : > { %p1348_p0 = pnand %p1346_p12, %p1677_p4  ;;  %p1355_p7 = por %p1354_p3, %p1353_p13 }
  0x61   : > { %p1349_p5 = pneg %p1348_p0 }
  0x63   : > { %p1356_p9 = pnand %p1355_p7, %p1349_p5 }
  0x65   : > { %1359 = shalt.err (!%p1356_p9)
}
  0x66   : > { %1165 = dma.hbm_to_vmem [thread:$0]  (!%p1954_p2), %s1924_s2, 1024, %s277_s17, [#allocation8], %s1517_s27, %s1517_s27, %s1518_s16  }
  0x67   : > { %s1519_s26 = smov [#allocation12]   ;;  %s1360_s21 = scalar_lea.hbm %s1928_s6, 1024 }
  0x68   : > { %s308_s12 = sshll.u32 %s1519_s26, 4  ;;  %p1361_p1 = scmp.ne.s32.totalorder %s1928_s6, %s1360_s21  ;;  %s309_s12 = int_to_ptr.vmem [resolvable:$true] %s308_s12 }
  0x69   : > { %p1367_p10 = scmp.lt.u32.totalorder %s1360_s21, %s1928_s6 }
  0x6a   : > { %p1363_p6 = pnand %p1361_p1, %p1677_p4 }
  0x6c   : > { %p1364_p8 = pneg %p1363_p6 }
  0x6e   : > { %p1369_p11 = pnand %p1367_p10, %p1364_p8 }
  0x70   : > { %1372 = shalt.err (!%p1369_p11)
}
  0x71   : > { %s1373_s17 = scalar_lea.vmem %s309_s12, 1024  ;;  %p1381_p13 = scmp.lt.s32.totalorder %s309_s12, %s309_s12 }
  0x72   : > { %p1374_p12 = scmp.ne.s32.totalorder %s309_s12, %s1373_s17  ;;  %p1382_p3 = scmp.lt.s32.totalorder %s1373_s17, %s1373_s17 }
  0x74   : > { %p1376_p0 = pnand %p1374_p12, %p1677_p4  ;;  %p1383_p7 = por %p1382_p3, %p1381_p13 }
  0x76   : > { %p1377_p5 = pneg %p1376_p0 }
  0x78   : > { %p1384_p9 = pnand %p1383_p7, %p1377_p5 }
  0x7a   : > { %1387 = shalt.err (!%p1384_p9)
}
  0x7b   : > { %1171 = dma.hbm_to_vmem [thread:$0]  (!%p1954_p2), %s1928_s6, 1024, %s309_s12, [#allocation11], %s1517_s27, %s1517_s27, %s1518_s16  }
  0x7c   : > { %s38_s22 = sadd.s32 1, %s1508_s9  ;;  %s47_s25 = sadd.s32 1, %s1500_s29 }
  0x7d   : > { %p40_p4 = scmp.ge.s32.totalorder %s38_s22, 2  ;;  %p54_p1 = scmp.ne.s32.totalorder %s1500_s29, %s1496_s28 }
  0x7e   : > { %p55_p6 = scmp.eq.s32.totalorder %s1512_s10, 0  ;;  %p1183_p8 = scmp.lt.s32.totalorder %s1512_s10, 2 }
  0x7f   : > { %s1973_s22 = smov (%p40_p4, %s38_s22), 0  ;;  %p1956_p11 = scmp.ne.s32.totalorder %s1945_s14, 0 }
  0x80   : > { %p56_p10 = por %p55_p6, %p54_p1  ;;  %s42_s26 = ssub.s32 %s1508_s9, %s1973_s22 }
  0x81   : > { %p1748_p12 = por %p1956_p11, %p54_p1  ;;  %s325_s19 = sand.u32 1, %s1500_s29  }
  0x82   : > { %p45_p0 = scmp.eq.s32.totalorder %s42_s26, 0  ;;  %s998_s27 = sshll.u32 %s325_s19, 2 }
  0x83   : > { %s999_s16 = sshll.u32 %s1508_s9, 6  ;;  %s329_s14 = scalar_lea.vmem [#allocation4], %s998_s27 }
  0x84   : > { %s1757_s12 = scalar_select %p45_p0, %s1500_s29, %s47_s25  }
  0x85   : > { %s1762_s23 = scalar_lea.hbm %s1922_s0, %s999_s16  ;;  %s337_s24 = sshll.u32 %s329_s14, 4  ;;  %s1770_s24 = int_to_ptr.vmem [resolvable:$true] %s337_s24 }
  0x86   : > { %p1766_p2 = pnand %p1183_p8, %p56_p10  ;;  %s326_s17 = scalar_lea.sflag [#allocation5], %s325_s19 }
  0x87   : > { %s1388_s4 = scalar_lea.hbm %s1762_s23, 64  ;;  %s1393_s26 = scalar_lea.hbm %s1922_s0, 128 }
  0x88   : > { %p1389_p5 = scmp.ne.s32.totalorder %s1762_s23, %s1388_s4  ;;  %p1390_p13 = pneg %p1766_p2 }
  0x89   : > { %p1394_p9 = scmp.lt.u32.totalorder %s1762_s23, %s1922_s0  ;;  %p1395_p4 = scmp.lt.u32.totalorder %s1393_s26, %s1388_s4 }
  0x8a   : > { %p1391_p3 = pnand %p1390_p13, %p1389_p5  ;;  %p1397_p6 = scmp.lt.u32.totalorder %s1388_s4, %s1762_s23 }
  0x8b   : > { %p1396_p1 = por %p1395_p4, %p1394_p9 }
  0x8c   : > { %p1392_p7 = pneg %p1391_p3 }
  0x8d   : > { %p1398_p8 = por %p1397_p6, %p1396_p1 }
  0x8f   : > { %p1399_p10 = pnand %p1398_p8, %p1392_p7 }
  0x91   : > { %1402 = shalt.err (!%p1399_p10)
}
  0x92   : > { %s1403_s19 = scalar_lea.vmem %s1770_s24, 64  ;;  %s1520_s20 = smov [#allocation4]  }
  0x93   : > { %p1404_p11 = scmp.ne.s32.totalorder %s1770_s24, %s1403_s19  ;;  %s1408_s21 = sshll.u32 %s1520_s20, 4  ;;  %s1409_s21 = int_to_ptr.vmem [resolvable:$false] %s1408_s21 }
  0x94   : > { %s1410_s14 = scalar_lea.vmem %s1409_s21, 128  ;;  %p1411_p3 = scmp.lt.s32.totalorder %s1770_s24, %s1409_s21 }
  0x95   : > { %p1406_p0 = pnand %p1404_p11, %p1390_p13  ;;  %p1412_p9 = scmp.lt.s32.totalorder %s1410_s14, %s1403_s19 }
  0x97   : > { %p1407_p5 = pneg %p1406_p0  ;;  %p1413_p4 = por %p1412_p9, %p1411_p3 }
  0x99   : > { %p1414_p1 = pnand %p1413_p4, %p1407_p5 }
  0x9b   : > { %1417 = shalt.err (!%p1414_p1)
}
  0x9c   : > { %1175 = dma.hbm_to_vmem [thread:$0]  (!%p1766_p2), %s1762_s23, 64, %s1770_s24, %s326_s17  }
  0x9d   : > { %p1959_p7 = scmp.ne.s32.totalorder %s1949_s18, 0 }
  0x9e   : > { %s1800_s4 = sand.u32 (!%p1959_p7), 1, %s1496_s28   ;;  %p1960_p13 = scmp.ne.s32.totalorder (!%p1959_p7), %s1946_s15, 0 }
  0x9f   : > { %346 = sbr.rel (%p1959_p7) target bundleno = 1058 (0x422), region = 52  ;;  %s1001_s8 = sshll.u32 (!%p1959_p7), %s1800_s4, 2 }
  0xa0   : > { %s349_s25 = scalar_lea.sflag (!%p1959_p7), [#allocation5], %s1800_s4  ;;  %s1804_s26 = scalar_lea.vmem (!%p1959_p7), [#allocation4], %s1001_s8 }
  0xa6   : > { %1471 = dma.done.wait (%p1960_p13), %s349_s25, 64  }
  0xa7   : > { %1473 = vsyncadd (%p1960_p13), %s349_s25, 4294967232 }
  0xa8   : > { %1475 = dma.done.wait (%p1960_p13), [#allocation8], 64  }
  0xa9   : > { %1477 = vsyncadd (%p1960_p13), [#allocation8], 4294967232  ;;  %p1961_p2 = scmp.ne.s32.totalorder %s1944_s13, 0 }
  0xab   : > { %1479 = dma.done.wait (%p1961_p2), [#allocation8], 1024  }
  0xac   : > { %1481 = vsyncadd (%p1961_p2), [#allocation8], 4294966272 }
  0xad   : > { %1483 = dma.done.wait (%p1961_p2), [#allocation11], 2048  }
  0xae   : > { %1485 = vsyncadd (%p1961_p2), [#allocation11], 4294965248  ;;  %v1521_v0 = vmov 0.0   ;;  %vm1522_vm0 = vmmov 0   ;;  %v1244_v1 = vld [vmem:[#allocation10] sm:$0xff]   ;;  %v1245_v2 = vld [vmem:[#allocation10 + $0x8] sm:$0xff]  }
  0xaf   : > { %1069 = vmatprep.subr.bf16.mxu0 %v1521_v0  ;;  %1085 = vmatprep.mubr.msk.bf16.mxu0 %vm1522_vm0, %v1521_v0  ;;  %v1246_v3 = vld [vmem:[#allocation10 + $0x10] sm:$0xff]   ;;  %v1247_v4 = vld [vmem:[#allocation10 + $0x18] sm:$0xff]   ;;  %v1248_v5 = vld [vmem:[#allocation10 + $0x20] sm:$0xff]   ;;  %vm807_vm1 = vcmask 1043456   ;;  %vm788_vm2 = vcmask 64512   ;;  %s1005_s17 = sshll.u32 %s1800_s4, 3 }
  0xb0   : > { %1089 = vmatprep.subr.bf16.mxu1 %v1521_v0  ;;  %1105 = vmatprep.mubr.msk.bf16.mxu1 %vm1522_vm0, %v1521_v0  ;;  %v1260_v6 = vld [vmem:[#allocation12] sm:$0xff]   ;;  %v1249_v7 = vld [vmem:[#allocation10 + $0x28] sm:$0xff]   ;;  %v1250_v9 = vld [vmem:[#allocation10 + $0x30] sm:$0xff]   ;;  %s1035_s27 = sshll.u32 %s1504_s30, 7  ;;  %s400_s16 = scalar_lea.vmem [#allocation13], %s1005_s17 }
  0xb1   : > { %1070 = vmatpush3.bf16.msra.mxu0 %v1244_v1  ;;  %1090 = vmatpush3.bf16.msra.mxu1 %v1260_v6  ;;  %v1261_v8 = vld [vmem:[#allocation12 + $0x8] sm:$0xff]   ;;  %v1262_v10 = vld [vmem:[#allocation12 + $0x10] sm:$0xff]   ;;  %v1251_v11 = vld [vmem:[#allocation10 + $0x38] sm:$0xff]   ;;  %s870_s19 = sshll.u32 %s400_s16, 4  ;;  %s1962_s14 = sld [smem:[#allocation23_spill]]  ;;  %s1875_s19 = int_to_ptr.vmem [resolvable:$true] %s870_s19 }
  0xb2   : > { %1071 = vmatprep.subr.bf16.mxu0 %v1521_v0  ;;  %1091 = vmatprep.subr.bf16.mxu1 %v1521_v0  ;;  %v1263_v12 = vld [vmem:[#allocation12 + $0x18] sm:$0xff]   ;;  %v1252_v14 = vld [vmem:[#allocation9] sm:$0xff]   ;;  %v1253_v16 = vld [vmem:[#allocation9 + $0x8] sm:$0xff]   ;;  %s856_s30 = scalar_lea.sflag [#allocation6], %s1800_s4  ;;  %s1418_s25 = scalar_lea.vmem %s1875_s19, 128 }
  0xb3   : > { %v406_v13 = vld [vmem:[#allocation7] sm:$0xf]  ;;  %v1264_v15 = vld [vmem:[#allocation12 + $0x20] sm:$0xff]   ;;  %v1265_v17 = vld [vmem:[#allocation12 + $0x28] sm:$0xff]   ;;  %p1419_p6 = scmp.ne.s32.totalorder %s1875_s19, %s1418_s25 }
  0xb4   : > { %v1254_v18 = vld [vmem:[#allocation9 + $0x10] sm:$0xff]   ;;  %v1255_v19 = vld [vmem:[#allocation9 + $0x18] sm:$0xff]   ;;  %v1256_v20 = vld [vmem:[#allocation9 + $0x20] sm:$0xff]  }
  0xb5   : > { %1072 = vmatpush3.bf16.msra.mxu0 %v1245_v2  ;;  %1092 = vmatpush3.bf16.msra.mxu1 %v1261_v8  ;;  %v1257_v21 = vld [vmem:[#allocation9 + $0x28] sm:$0xff]   ;;  %v1258_v22 = vld [vmem:[#allocation9 + $0x30] sm:$0xff]   ;;  %v1259_v23 = vld [vmem:[#allocation9 + $0x38] sm:$0xff]   ;;  %p1420_p8 = pnand %p1419_p6, %p1748_p12 }
  0xb6   : > { %1073 = vmatprep.subr.bf16.mxu0 %v1521_v0  ;;  %1093 = vmatprep.subr.bf16.mxu1 %v1521_v0  ;;  %v633_v24 = vld [vmem:[%s1804_s26] sm:$0xf]  ;;  %v1006_v27 = vld [vmem:[%s1927_s5] ss:$0 sm:$0xff]  ;;  %s1523_s26 = smov [#allocation13]  }
  0xb7   : > { %v1266_v25 = vld [vmem:[#allocation12 + $0x30] sm:$0xff]   ;;  %v1267_v26 = vld [vmem:[#allocation12 + $0x38] sm:$0xff]   ;;  %v1024_v35 = vld [vmem:[%s1925_s3] ss:$0 sm:$0xff]  ;;  %s1873_s8 = scalar_lea.hbm %s1962_s14, %s1035_s27  ;;  %p1421_p10 = pneg %p1420_p8 }
  0xb8   : > { %v1015_v42 = vld [vmem:[%s1929_s7] ss:$0 sm:$0xff]  ;;  %s1422_s13 = sshll.u32 %s1523_s26, 4  ;;  %s1423_s13 = int_to_ptr.vmem [resolvable:$false] %s1422_s13 }
  0xb9   : > { %1074 = vmatpush3.bf16.msra.mxu0 %v1246_v3  ;;  %1094 = vmatpush3.bf16.msra.mxu1 %v1262_v10  ;;  %s1424_s15 = scalar_lea.vmem %s1423_s13, 256  ;;  %p1425_p11 = scmp.lt.s32.totalorder %s1875_s19, %s1423_s13 }
  0xba   : > { %1075 = vmatprep.subr.bf16.mxu0 %v1521_v0  ;;  %1095 = vmatprep.subr.bf16.mxu1 %v1521_v0  ;;  %p1426_p0 = scmp.lt.s32.totalorder %s1424_s15, %s1418_s25 }
  0xbc   : > { %p1427_p5 = por %p1426_p0, %p1425_p11 }
  0xbd   : > { %1076 = vmatpush3.bf16.msra.mxu0 %v1247_v4  ;;  %1096 = vmatpush3.bf16.msra.mxu1 %v1263_v12 }
  0xbe   : > { %1077 = vmatprep.subr.bf16.mxu0 %v1521_v0  ;;  %1097 = vmatprep.subr.bf16.mxu1 %v1521_v0  ;;  %p1428_p3 = pnand %p1427_p5, %p1421_p10 }
  0xc1   : > { %1078 = vmatpush3.bf16.msra.mxu0 %v1248_v5  ;;  %1098 = vmatpush3.bf16.msra.mxu1 %v1264_v15 }
  0xc2   : > { %1079 = vmatprep.subr.bf16.mxu0 %v1521_v0  ;;  %1099 = vmatprep.subr.bf16.mxu1 %v1521_v0 }
  0xc5   : > { %1080 = vmatpush3.bf16.msra.mxu0 %v1249_v7  ;;  %1100 = vmatpush3.bf16.msra.mxu1 %v1265_v17 }
  0xc6   : > { %1081 = vmatprep.subr.bf16.mxu0 %v1521_v0  ;;  %1101 = vmatprep.subr.bf16.mxu1 %v1521_v0 }
  0xc9   : > { %1082 = vmatpush3.bf16.msra.mxu0 %v1250_v9  ;;  %1102 = vmatpush3.bf16.msra.mxu1 %v1266_v25 }
  0xca   : > { %1083 = vmatprep.subr.bf16.mxu0 %v1521_v0  ;;  %1103 = vmatprep.subr.bf16.mxu1 %v1521_v0 }
  0xcd   : > { %1084 = vmatpush3.bf16.msra.mxu0 %v1251_v11  ;;  %1104 = vmatpush3.bf16.msra.mxu1 %v1267_v26 }
  0xce   : > { %1109 = vmatprep.subr.bf16.mxu0 %v1521_v0  ;;  %1129 = vmatprep.subr.bf16.mxu1 %v1521_v0 }
  0xd0   : > { %1086 = vmatmul.mubr.bf16.vlgmr.msra.gmra.mrb[0].mxu0 %v406_v13  ;;  %1106 = vmatmul.mubr.bf16.vlgmr.msra.gmra.mrb[0].mxu1 %v406_v13 }
  0xd1   : > { %1110 = vmatpush3.bf16.msra.mxu0 %v1252_v14  ;;  %1125 = vmatprep.mubr.msk.bf16.mxu0 %vm1522_vm0, %v1521_v0 }
  0xd2   : > { %1111 = vmatprep.subr.bf16.mxu0 %v1521_v0  ;;  %1131 = vmatprep.mubr.msk.bf16.mxu1 %vm1522_vm0, %v1521_v0 }
  0xd5   : > { %1112 = vmatpush3.bf16.msra.mxu0 %v1253_v16 }
  0xd6   : > { %1113 = vmatprep.subr.bf16.mxu0 %v1521_v0 }
  0xd9   : > { %1114 = vmatpush3.bf16.msra.mxu0 %v1254_v18 }
  0xda   : > { %1115 = vmatprep.subr.bf16.mxu0 %v1521_v0 }
  0xdd   : > { %1116 = vmatpush3.bf16.msra.mxu0 %v1255_v19 }
  0xde   : > { %1117 = vmatprep.subr.bf16.mxu0 %v1521_v0 }
  0xe1   : > { %1118 = vmatpush3.bf16.msra.mxu0 %v1256_v20 }
  0xe2   : > { %1119 = vmatprep.subr.bf16.mxu0 %v1521_v0 }
  0xe5   : > { %1120 = vmatpush3.bf16.msra.mxu0 %v1257_v21 }
  0xe6   : > { %1121 = vmatprep.subr.bf16.mxu0 %v1521_v0 }
  0xe9   : > { %1122 = vmatpush3.bf16.msra.mxu0 %v1258_v22 }
  0xea   : > { %1123 = vmatprep.subr.bf16.mxu0 %v1521_v0 }
  0xed   : > { %1124 = vmatpush3.bf16.msra.mxu0 %v1259_v23 }
  0xf0   : > { %1126 = vmatmul.mubr.bf16.vlgmr.msra.gmra.mrb[4].mxu0 %v633_v24 }
 0x1a3   : > { %v512_v28 = vpop.f32.mrb[0].mxu0  ;;  %v623_v43 = vpop.f32.mrb[0].mxu1 }
 0x1a4   : > { %v513_v29 = vadd.f32 %v1006_v27, %v512_v28  ;;  %v1087_v30 = vpop.f32.mrb[1].mxu0  ;;  %v624_v44 = vadd.f32 %v1015_v42, %v623_v43  ;;  %v1107_v45 = vpop.f32.mrb[1].mxu1 }
 0x1a5   : > { %v515_v31 = vpop.f32.mrb[2].mxu0  ;;  %v626_v46 = vpop.f32.mrb[2].mxu1 }
 0x1a6   : > { %v629_v32 = vpack.c.bf16 %v513_v29, %v513_v29  ;;  %v1088_v33 = vpop.f32.mrb[3].mxu0  ;;  %v631_v47 = vpack.c.bf16 %v624_v44, %v624_v44  ;;  %v1108_v48 = vpop.f32.mrb[3].mxu1 }
 0x1a8   : > { %630 = vst [vmem:[#allocation2] sm:$0xf] %v629_v32  ;;  %632 = vst [vmem:[#allocation3] sm:$0xf] %v631_v47 }
 0x1af   : > { %v746_v34 = vld [vmem:[#allocation2] sm:$0xf]  ;;  %v747_v49 = vld [vmem:[#allocation3] sm:$0xf] }
 0x1b0   : > { %1130 = vmatpush3.bf16.xpose.msra.mxu1 %v746_v34  ;;  %v809_v50 = vsel %vm807_vm1, %v747_v49, 0 }
 0x1b1   : > { %1135 = vmatprep.subr.bf16.mxu1 %v1521_v0 }
 0x1c3   : > { %v739_v36 = vpop.f32.mrb[4].mxu0 }
 0x1c4   : > { %v740_v37 = vadd.f32 %v1024_v35, %v739_v36  ;;  %v1127_v38 = vpop.f32.mrb[5].mxu0 }
 0x1c5   : > { %v742_v39 = vpop.f32.mrb[6].mxu0 }
 0x1c6   : > { %v745_v40 = vpack.c.bf16 %v740_v37, %v740_v37  ;;  %v1128_v41 = vpop.f32.mrb[7].mxu0 }
 0x1c8   : > { %1132 = vmatmul.mubr.bf16.vlgmr.msra.gmra.mrb[4].mxu1 %v745_v40 }
 0x1c9   : > { %1137 = vmatprep.mubr.msk.bf16.mxu1 %vm1522_vm0, %v1521_v0  ;;  %1136 = vmatpush3.bf16.msra.mxu1 %v809_v50 }
 0x29b   : > { %v782_v51 = vpop.f32.mrb[4].mxu1 }
 0x29c   : > { %v1133_v52 = vpop.f32.mrb[5].mxu1  ;;  %v789_v53 = vsel %vm788_vm2, %v782_v51, -inf }
 0x29d   : > { %790 = vmax.xlane.f32.xlu0 %v789_v53  ;;  %v785_v54 = vpop.f32.mrb[6].mxu1 }
 0x29e   : > { %v1134_v55 = vpop.f32.mrb[7].mxu1 }
 0x32a   : > { %v791_v56 = vpop.xlane.xlu0 %790 }
 0x32b   : > { %v795_v57 = vsub.f32 %v782_v51, %v791_v56  ;;  %v792_v62 = vsub.f32 -inf, %v791_v56 }
 0x32d   : > { %v796_v58 = vmul.f32 1.442695, %v795_v57  ;;  %v793_v63 = vmul.f32 1.442695, %v792_v62 }
 0x32f   : > { %1268 = vpow2.f32 %v796_v58 }
 0x330   : > { %1270 = vpow2.f32 %v793_v63 }
 0x339   : > { %v1269_v59 = vpop.eup %1268 }
 0x33a   : > { %v799_v60 = vsel %vm788_vm2, %v1269_v59, 0.0  ;;  %v803_v61 = vpack.c.bf16 %v1269_v59, %v1269_v59  ;;  %v1271_v0 = vpop.eup %1270 }
 0x33b   : > { %800 = vadd.xlane.f32.xlu0 %v799_v60  ;;  %v798_v2 = vmul.f32 0.0, %v1271_v0 }
 0x33c   : > { %1138 = vmatmul.mubr.msk.bf16.vlgmr.msra.gmra.mrb[8].mxu1 %vm788_vm2, %v803_v61 }
 0x3c8   : > { %v801_v1 = vpop.xlane.xlu0 %800 }
 0x3c9   : > { %v802_v3 = vadd.f32 %v801_v1, %v798_v2 }
 0x3cb   : > { %1272 = vrcp.f32 %v802_v3 }
 0x3d5   : > { %v1273_v7 = vpop.eup %1272 }
 0x40f   : > { %v845_v4 = vpop.f32.mrb[8].mxu1 }
 0x410   : > { %v851_v5 = vadd.f32 %v845_v4, %v798_v2  ;;  %v1139_v6 = vpop.f32.mrb[9].mxu1 }
 0x411   : > { %v848_v8 = vpop.f32.mrb[10].mxu1 }
 0x412   : > { %v853_v9 = vmul.f32 %v1273_v7, %v851_v5  ;;  %v1140_v10 = vpop.f32.mrb[11].mxu1 }
 0x414   : > { %854 = vst [vmem:[%s400_s16] sm:$0xff] %v853_v9 }
 0x415   : > { %1431 = shalt.err (!%p1428_p3)
}
 0x416   : > { %s1432_s4 = scalar_lea.hbm %s1873_s8, 128  ;;  %s1436_s24 = scalar_lea.hbm %s1962_s14, 256 }
 0x417   : > { %p1433_p9 = scmp.ne.s32.totalorder %s1873_s8, %s1432_s4  ;;  %p1437_p7 = scmp.lt.u32.totalorder %s1873_s8, %s1962_s14 }
 0x418   : > { %p1438_p13 = scmp.lt.u32.totalorder %s1436_s24, %s1432_s4  ;;  %p1440_p6 = scmp.lt.u32.totalorder %s1432_s4, %s1873_s8 }
 0x419   : > { %p1434_p4 = pnand %p1433_p9, %p1748_p12 }
 0x41a   : > { %p1439_p2 = por %p1438_p13, %p1437_p7 }
 0x41b   : > { %p1435_p1 = pneg %p1434_p4 }
 0x41c   : > { %p1441_p8 = por %p1440_p6, %p1439_p2 }
 0x41e   : > { %p1442_p10 = pnand %p1441_p8, %p1435_p1 }
 0x420   : > { %1445 = shalt.err (!%p1442_p10)
}
 0x421   : > { %1157 = dma.vmem_to_hbm [thread:$0]  (%p1748_p12), %s1875_s19, 128, %s1873_s8, %s856_s30  }
 0x422 PF: > { %s1963_s27 = sld [smem:[#allocation19_spill]]  ;;  %s1964_s16 = sld [smem:[#allocation20_spill]] }
 0x423   : > { %p1966_p0 = scmp.ge.s32.totalorder %s1512_s10, 2 }
 0x428   : > { %s882_s20 = sand.u32 1, %s1963_s27   ;;  %p1965_p11 = scmp.ne.s32.totalorder %s1964_s16, 0 }
 0x429   : > { %s883_s21 = scalar_lea.sflag [#allocation6], %s882_s20 }
 0x42a   : > { %p1177_p5 = pnand %p1966_p0, %p1965_p11 }
 0x42c   : > { %1487 = dma.done.wait (!%p1177_p5), %s883_s21, 128  }
 0x42d   : > { %1489 = vsyncadd (!%p1177_p5), %s883_s21, 4294967168  ;;  %s26_s10 = sadd.s32 1, %s1512_s10   ;;  %s1967_s27 = smov %s1496_s28 }
 0x42e   : > { %p23_p3 = scmp.ge.s32.totalorder %s26_s10, 4   ;;  %s1968_s28 = smov %s1500_s29 }
 0x42f   : > { %s1969_s29 = smov %s1757_s12  ;;  %s1970_s30 = smov %s1508_s9 }
 0x430   : > { %s1971_s9 = smov %s1973_s22  ;;  %25 = sbr.rel (!%p23_p3) target bundleno = 12 (0xc), region = 118 }
 0x437   :  { %888 = vsyncpa [#allocation5], 1 }
 0x438   :  { %890 = vsyncpa [#allocation5 + $0x1], 1 }
 0x439   :  { %891 = vsyncpa [#allocation8], 1 }
 0x43a   :  { %892 = vsyncpa [#allocation11], 1 }
 0x43b   :  { %893 = vsyncpa [#allocation6], 1 }
 0x43c   :  { %895 = vsyncpa [#allocation6 + $0x1], 1 }

</bundles_post_ra>
